<compile_context>
chip_gen: v6e
topology: v6e:2x2x1
jax: 0.10.0
libtpu: 0.0.40
codegen_flags: <defaults>
</compile_context>

<pallas_src>
import functools

import jax
import jax.numpy as jnp
from jax.experimental import pallas as pl
from jax.experimental.pallas import tpu as pltpu

BN_EPS = 1e-5


# --------------------------------------------------------------------------
# Hardware queries (guarded; fall back to conservative defaults)
# --------------------------------------------------------------------------
@functools.lru_cache(maxsize=None)
def _vmem_capacity_bytes():
    try:
        return int(getattr(pltpu.get_tpu_info(), "vmem_capacity_bytes",
                           128 << 20))
    except Exception:
        return 128 << 20


@functools.lru_cache(maxsize=None)
def _num_tensorcores():
    # v7x has 2 TensorCores per chip; v5e/v6e have 1.  Heuristic & guarded.
    try:
        kind = jax.devices()[0].device_kind.lower()
    except Exception:
        return 1
    return 2 if "v7" in kind else 1


# --------------------------------------------------------------------------
# Kernels
# --------------------------------------------------------------------------
def _fc1_bn_relu_kernel(x_ref, w1_ref, gamma_ref, beta_ref, h_ref, acc_ref,
                        *, compute_dtype):
    """h = relu(BN_train(x @ W1.T)).  Grid = (hidden_tiles, k_tiles)."""
    k = pl.program_id(1)

    @pl.when(k == 0)
    def _():
        acc_ref[...] = jnp.zeros_like(acc_ref)

    # Cast to the compute dtype in-kernel (inputs stay f32 / PyTorch-layout in
    # HBM; no wrapper-side transpose/cast pass).  (B, tk) x (th, tk)^T on MXU.
    xb = x_ref[...].astype(compute_dtype)
    wb = w1_ref[...].astype(compute_dtype)
    acc_ref[...] += jax.lax.dot_general(
        xb, wb, dimension_numbers=(((1,), (1,)), ((), ())),
        preferred_element_type=jnp.float32)

    @pl.when(k == pl.num_programs(1) - 1)
    def _():
        pre = acc_ref[...]                                   # (B, th) f32
        # Training-mode BatchNorm1d with batch stats (biased variance),
        # one-pass: var = E[x^2] - E[x]^2.  fc1's bias is cancelled exactly by
        # the mean subtraction, so it is never loaded.  gamma/beta/mean/var
        # fold into a single fused scale + shift.
        mean = jnp.mean(pre, axis=0, keepdims=True)
        mean_sq = jnp.mean(pre * pre, axis=0, keepdims=True)
        var = jnp.maximum(mean_sq - mean * mean, 0.0)
        inv = jax.lax.rsqrt(var + BN_EPS)                    # EUP slot
        scale = gamma_ref[...] * inv                         # (1, th)
        shift = beta_ref[...] - scale * mean                 # (1, th)
        h_ref[...] = jnp.maximum(pre * scale + shift, 0.0).astype(h_ref.dtype)


def _fc2_kernel(h_ref, w2_ref, b2_ref, o_ref, *, compute_dtype):
    """out = h @ W2.T + b2.  Grid = (batch_tiles, out_tiles), both parallel."""
    hb = h_ref[...]                                          # already compute dtype
    wb = w2_ref[...].astype(compute_dtype)                   # (tn, hidden)
    out = jax.lax.dot_general(
        hb, wb, dimension_numbers=(((1,), (1,)), ((), ())),
        preferred_element_type=jnp.float32)
    o_ref[...] = (out + b2_ref[...]).astype(o_ref.dtype)


# --------------------------------------------------------------------------
# Wrapper
# --------------------------------------------------------------------------
def _pick_tile(dim, preferred):
    """Use `preferred` if it divides `dim`, otherwise the whole dimension."""
    return preferred if dim % preferred == 0 else dim


def _nbytes(shape, dtype):
    n = 1
    for s in shape:
        n *= int(s)
    return n * jnp.dtype(dtype).itemsize


def _vmem_limit(estimate_bytes):
    # 2x headroom, floor 8 MiB, cap at 75% of the queried per-core VMEM so
    # Mosaic keeps room for internal scratch / semaphores on every generation.
    cap = int(0.75 * _vmem_capacity_bytes())
    return int(min(max(2 * estimate_bytes, 8 << 20), cap))


@functools.partial(jax.jit, static_argnames=("tn", "tb", "th", "tk",
                                             "compute_dtype", "out_dtype"))
def prediction_mlp(x, w1, b1, gamma, beta, w2, b2, *,
                   tn=256, tb=None, th=None, tk=512,
                   compute_dtype=jnp.bfloat16, out_dtype=None):
    """x: (B, in_dim).  w1: (hidden, in_dim), w2: (out_dim, hidden) — PyTorch layout."""
    B, in_dim = x.shape
    hidden = w1.shape[0]
    out_dim = w2.shape[0]
    od = jnp.dtype(out_dtype) if out_dtype is not None else x.dtype
    cd = jnp.dtype(compute_dtype)

    # b1 is unused on purpose: training-mode BN cancels it exactly.
    del b1
    # TODO(synk): nn.BatchNorm1d also updates running_mean/running_var in
    # training mode; this kernel implements the forward math only.

    budget = int(0.6 * _vmem_capacity_bytes())

    # ---- tile selection ----------------------------------------------------
    # Phase 1 hidden tile: full hidden on single-TC parts (x read once);
    # 2 tiles on a 2-TensorCore part so the "parallel" axis feeds both cores.
    if th is None:
        ncores = _num_tensorcores()
        th = hidden
        if ncores >= 2 and hidden % (128 * ncores) == 0:
            th = hidden // ncores
    else:
        th = _pick_tile(hidden, th)

    tk = _pick_tile(in_dim, tk)

    def _est1(tk_):
        return (2 * (_nbytes((B, tk_), x.dtype) + _nbytes((th, tk_), w1.dtype)
                     + 2 * _nbytes((1, th), jnp.float32)
                     + _nbytes((B, th), cd))
                + _nbytes((B, th), jnp.float32))

    # Large-batch guard: shrink the K tile while the (double-buffered) x block
    # plus the f32 accumulator would overflow the VMEM budget.
    while _est1(tk) > budget and tk % 256 == 0 and in_dim % (tk // 2) == 0:
        tk //= 2
    # TODO(synk): for batches so large that even tk=128 overflows VMEM,
    # restructure BN as sum / sum-of-squares accumulation + a tiled normalize.

    tn = _pick_tile(out_dim, tn)
    if tb is None:
        tb = B          # full batch resident -> W2 fetched exactly once
        def _est2(tb_):
            return 2 * (_nbytes((tb_, hidden), cd)
                        + _nbytes((tn, hidden), w2.dtype)
                        + _nbytes((1, tn), jnp.float32)
                        + _nbytes((tb_, tn), od))
        while _est2(tb) > budget and tb % 16 == 0 and B % (tb // 2) == 0:
            tb //= 2
    else:
        tb = _pick_tile(B, tb)

    # Tiny per-feature vectors -> (1, F) lane rows; negligible glue.
    gammar = gamma.reshape(1, hidden).astype(jnp.float32)
    betar = beta.reshape(1, hidden).astype(jnp.float32)
    b2r = b2.reshape(1, out_dim).astype(jnp.float32)

    # ---- phase 1: h = relu(BN(x @ W1.T)) -----------------------------------
    h = pl.pallas_call(
        functools.partial(_fc1_bn_relu_kernel, compute_dtype=cd),
        out_shape=jax.ShapeDtypeStruct((B, hidden), cd),
        grid_spec=pltpu.PrefetchScalarGridSpec(
            num_scalar_prefetch=0,
            grid=(hidden // th, in_dim // tk),
            in_specs=[
                pl.BlockSpec((B, tk), lambda i, k: (0, k)),     # x K-tile
                pl.BlockSpec((th, tk), lambda i, k: (i, k)),    # W1 tile (PyTorch layout)
                pl.BlockSpec((1, th), lambda i, k: (0, i)),     # gamma
                pl.BlockSpec((1, th), lambda i, k: (0, i)),     # beta
            ],
            out_specs=pl.BlockSpec((B, th), lambda i, k: (0, i)),
            scratch_shapes=[pltpu.VMEM((B, th), jnp.float32)],
        ),
        compiler_params=pltpu.CompilerParams(
            dimension_semantics=("parallel", "arbitrary"),
            vmem_limit_bytes=_vmem_limit(_est1(tk))),
    )(x, w1, gammar, betar)

    # ---- phase 2: out = h @ W2.T + b2 --------------------------------------
    est2 = 2 * (_nbytes((tb, hidden), cd) + _nbytes((tn, hidden), w2.dtype)
                + _nbytes((1, tn), jnp.float32) + _nbytes((tb, tn), od))
    out = pl.pallas_call(
        functools.partial(_fc2_kernel, compute_dtype=cd),
        out_shape=jax.ShapeDtypeStruct((B, out_dim), od),
        grid_spec=pltpu.PrefetchScalarGridSpec(
            num_scalar_prefetch=0,
            grid=(B // tb, out_dim // tn),
            in_specs=[
                pl.BlockSpec((tb, hidden), lambda b, n: (b, 0)),   # h rows
                pl.BlockSpec((tn, hidden), lambda b, n: (n, 0)),   # W2 tile (PyTorch layout)
                pl.BlockSpec((1, tn), lambda b, n: (0, n)),        # b2
            ],
            out_specs=pl.BlockSpec((tb, tn), lambda b, n: (b, n)),
        ),
        compiler_params=pltpu.CompilerParams(
            dimension_semantics=("parallel", "parallel"),
            vmem_limit_bytes=_vmem_limit(est2)),
    )(h, w2, b2r)
    return out


# --------------------------------------------------------------------------
# Reference (faithful to the PyTorch module, f32 throughout)
# --------------------------------------------------------------------------
def _reference(x, w1, b1, gamma, beta, w2, b2):
    pre = x @ w1.T + b1
    mean = jnp.mean(pre, axis=0, keepdims=True)
    var = jnp.mean((pre - mean) ** 2, axis=0, keepdims=True)
    h = gamma * (pre - mean) / jnp.sqrt(var + BN_EPS) + beta
    h = jnp.maximum(h, 0.0)
    return h @ w2.T + b2


if __name__ == "__main__":
    # Small shapes consistent with the module's bottleneck MLP structure.
    B, in_dim, hidden_dim, out_dim = 8, 256, 128, 256

    key = jax.random.PRNGKey(0)
    k1, k2, k3, k4, kx = jax.random.split(key, 5)

    w1 = jax.random.normal(k1, (hidden_dim, in_dim), jnp.float32) * 0.02
    b1 = jax.random.normal(k2, (hidden_dim,), jnp.float32) * 0.01
    gamma = jnp.ones((hidden_dim,), jnp.float32)
    beta = jnp.zeros((hidden_dim,), jnp.float32)
    w2 = jax.random.normal(k3, (out_dim, hidden_dim), jnp.float32) * 0.02
    b2 = jax.random.normal(k4, (out_dim,), jnp.float32) * 0.01

    x = jax.random.normal(kx, (B, in_dim), jnp.float32)

    ref = _reference(x, w1, b1, gamma, beta, w2, b2)

    # Default path (bf16 matmuls on the MXU, f32 BN math / accumulation).
    out = prediction_mlp(x, w1, b1, gamma, beta, w2, b2)
    out = jax.block_until_ready(out)
    assert out.shape == (B, out_dim)
    assert out.dtype == x.dtype
    assert jnp.allclose(out, ref, atol=3e-2, rtol=3e-2), "bf16 kernel mismatch"

    # Full-f32 path for a tight correctness check of the fused structure.
    out_f32 = prediction_mlp(x, w1, b1, gamma, beta, w2, b2,
                             compute_dtype=jnp.float32)
    out_f32 = jax.block_until_ready(out_f32)
    assert jnp.allclose(out_f32, ref, atol=1e-3, rtol=1e-3), "f32 kernel mismatch"

    print("KERNEL_OK")
</pallas_src>

<mosaic_0001>
module attributes {stable_mosaic.version = 11 : i64} {
  func.func @_fc2_kernel(%arg0: i32, %arg1: i32, %arg2: memref<8x128xbf16, #tpu.memory_space<vmem>>, %arg3: memref<256x128xf32, #tpu.memory_space<vmem>>, %arg4: memref<1x256xf32, #tpu.memory_space<vmem>>, %arg5: memref<8x256xf32, #tpu.memory_space<vmem>>) attributes {dimension_semantics = [#tpu.dimension_semantics<parallel>, #tpu.dimension_semantics<parallel>], iteration_bounds = array<i64: 1, 1>, scalar_prefetch = 0 : i64, scratch_operands = 0 : i64, tpu.core_type = #tpu.core_type<tc>, window_params = [{transform_indices = @transform_0, window_bounds = array<i64: 8, 128>}, {transform_indices = @transform_1, window_bounds = array<i64: 256, 128>}, {transform_indices = @transform_2, window_bounds = array<i64: 1, 256>}, {transform_indices = @transform_3, window_bounds = array<i64: 8, 256>}]} {
    %c0 = arith.constant 0 : index
    %c0_0 = arith.constant 0 : index
    %0 = vector.load %arg2[%c0, %c0_0] : memref<8x128xbf16, #tpu.memory_space<vmem>>, vector<8x128xbf16>
    %c0_1 = arith.constant 0 : index
    %c0_2 = arith.constant 0 : index
    %1 = vector.load %arg3[%c0_1, %c0_2] : memref<256x128xf32, #tpu.memory_space<vmem>>, vector<256x128xf32>
    %2 = arith.truncf %1 : vector<256x128xf32> to vector<256x128xbf16>
    %cst = arith.constant dense<0.000000e+00> : vector<8x256xf32>
    %3 = tpu.matmul %0, %2, %cst {dimension_numbers = #tpu.dot_dimension_numbers<[1], [1], [0], [0], [0, 0, 1, 0], [], []>} : vector<8x128xbf16>, vector<256x128xbf16>, vector<8x256xf32> -> vector<8x256xf32>
    %c0_3 = arith.constant 0 : index
    %c0_4 = arith.constant 0 : index
    %4 = vector.load %arg4[%c0_3, %c0_4] : memref<1x256xf32, #tpu.memory_space<vmem>>, vector<1x256xf32>
    %5 = vector.broadcast %4 : vector<1x256xf32> to vector<8x256xf32>
    %6 = arith.addf %3, %5 : vector<8x256xf32>
    %c0_5 = arith.constant 0 : index
    %c0_6 = arith.constant 0 : index
    %7 = vector.load %arg5[%c0_5, %c0_6] : memref<8x256xf32, #tpu.memory_space<vmem>>, vector<8x256xf32>
    tpu.vector_store %arg5[%c0_5, %c0_6], %6 {strides = array<i32>} : memref<8x256xf32, #tpu.memory_space<vmem>>, vector<8x256xf32>,
    return
  }
  func.func @transform_0(%arg0: i32, %arg1: i32) -> (i32, i32) {
    %c0_i32 = arith.constant 0 : i32
    %c0_i32_0 = arith.constant 0 : i32
    return %arg0, %c0_i32 : i32, i32
  }
  func.func @transform_1(%arg0: i32, %arg1: i32) -> (i32, i32) {
    %c0_i32 = arith.constant 0 : i32
    %c0_i32_0 = arith.constant 0 : i32
    return %arg1, %c0_i32 : i32, i32
  }
  func.func @transform_2(%arg0: i32, %arg1: i32) -> (i32, i32) {
    %c0_i32 = arith.constant 0 : i32
    %c0_i32_0 = arith.constant 0 : i32
    return %c0_i32, %arg1 : i32, i32
  }
  func.func @transform_3(%arg0: i32, %arg1: i32) -> (i32, i32) {
    %c0_i32 = arith.constant 0 : i32
    return %arg0, %arg1 : i32, i32
  }
}

module attributes {stable_mosaic.version = 11 : i64} {
  func.func @_fc1_bn_relu_kernel(%arg0: i32, %arg1: i32, %arg2: memref<8x256xf32, #tpu.memory_space<vmem>>, %arg3: memref<128x256xf32, #tpu.memory_space<vmem>>, %arg4: memref<1x128xf32, #tpu.memory_space<vmem>>, %arg5: memref<1x128xf32, #tpu.memory_space<vmem>>, %arg6: memref<8x128xbf16, #tpu.memory_space<vmem>>, %arg7: memref<8x128xf32, #tpu.memory_space<vmem>>) attributes {dimension_semantics = [#tpu.dimension_semantics<parallel>, #tpu.dimension_semantics<arbitrary>], iteration_bounds = array<i64: 1, 1>, scalar_prefetch = 0 : i64, scratch_operands = 1 : i64, tpu.core_type = #tpu.core_type<tc>, window_params = [{transform_indices = @transform_0, window_bounds = array<i64: 8, 256>}, {transform_indices = @transform_1, window_bounds = array<i64: 128, 256>}, {transform_indices = @transform_2, window_bounds = array<i64: 1, 128>}, {transform_indices = @transform_3, window_bounds = array<i64: 1, 128>}, {transform_indices = @transform_4, window_bounds = array<i64: 8, 128>}]} {
    %c0_i32 = arith.constant 0 : i32
    %0 = arith.cmpi eq, %arg1, %c0_i32 : i32
    %1 = arith.extui %0 : i1 to i32
    %c0_i32_0 = arith.constant 0 : i32
    %2 = arith.cmpi ne, %1, %c0_i32_0 : i32
    scf.if %2 {
      %cst_10 = arith.constant 0.000000e+00 : f32
      %14 = vector.broadcast %cst_10 : f32 to vector<8x128xf32>
      %c0_11 = arith.constant 0 : index
      %c0_12 = arith.constant 0 : index
      %15 = vector.load %arg7[%c0_11, %c0_12] : memref<8x128xf32, #tpu.memory_space<vmem>>, vector<8x128xf32>
      tpu.vector_store %arg7[%c0_11, %c0_12], %14 {strides = array<i32>} : memref<8x128xf32, #tpu.memory_space<vmem>>, vector<8x128xf32>,
    } else {
    }
    %c0 = arith.constant 0 : index
    %c0_1 = arith.constant 0 : index
    %3 = vector.load %arg2[%c0, %c0_1] : memref<8x256xf32, #tpu.memory_space<vmem>>, vector<8x256xf32>
    %4 = arith.truncf %3 : vector<8x256xf32> to vector<8x256xbf16>
    %c0_2 = arith.constant 0 : index
    %c0_3 = arith.constant 0 : index
    %5 = vector.load %arg3[%c0_2, %c0_3] : memref<128x256xf32, #tpu.memory_space<vmem>>, vector<128x256xf32>
    %6 = arith.truncf %5 : vector<128x256xf32> to vector<128x256xbf16>
    %c0_4 = arith.constant 0 : index
    %c0_5 = arith.constant 0 : index
    %7 = vector.load %arg7[%c0_4, %c0_5] : memref<8x128xf32, #tpu.memory_space<vmem>>, vector<8x128xf32>
    %cst = arith.constant dense<0.000000e+00> : vector<8x128xf32>
    %8 = tpu.matmul %4, %6, %cst {dimension_numbers = #tpu.dot_dimension_numbers<[1], [1], [0], [0], [0, 0, 1, 0], [], []>} : vector<8x256xbf16>, vector<128x256xbf16>, vector<8x128xf32> -> vector<8x128xf32>
    %9 = arith.addf %7, %8 : vector<8x128xf32>
    %c0_6 = arith.constant 0 : index
    %c0_7 = arith.constant 0 : index
    %10 = vector.load %arg7[%c0_6, %c0_7] : memref<8x128xf32, #tpu.memory_space<vmem>>, vector<8x128xf32>
    tpu.vector_store %arg7[%c0_6, %c0_7], %9 {strides = array<i32>} : memref<8x128xf32, #tpu.memory_space<vmem>>, vector<8x128xf32>,
    %c0_i32_8 = arith.constant 0 : i32
    %11 = arith.cmpi eq, %arg1, %c0_i32_8 : i32
    %12 = arith.extui %11 : i1 to i32
    %c0_i32_9 = arith.constant 0 : i32
    %13 = arith.cmpi ne, %12, %c0_i32_9 : i32
    scf.if %13 {
      %c0_10 = arith.constant 0 : index
      %c0_11 = arith.constant 0 : index
      %14 = vector.load %arg7[%c0_10, %c0_11] : memref<8x128xf32, #tpu.memory_space<vmem>>, vector<8x128xf32>
      %cst_12 = arith.constant dense<0.000000e+00> : vector<128xf32>
      %15 = vector.multi_reduction <add>, %14, %cst_12 [0] : vector<8x128xf32> to vector<128xf32>
      %16 = vector.shape_cast %15 : vector<128xf32> to vector<1x128xf32>
      %cst_13 = arith.constant 8.000000e+00 : f32
      %17 = vector.broadcast %cst_13 : f32 to vector<1x128xf32>
      %18 = arith.divf %16, %17 : vector<1x128xf32>
      %19 = arith.mulf %14, %14 : vector<8x128xf32>
      %cst_14 = arith.constant dense<0.000000e+00> : vector<128xf32>
      %20 = vector.multi_reduction <add>, %19, %cst_14 [0] : vector<8x128xf32> to vector<128xf32>
      %21 = vector.shape_cast %20 : vector<128xf32> to vector<1x128xf32>
      %cst_15 = arith.constant 8.000000e+00 : f32
      %22 = vector.broadcast %cst_15 : f32 to vector<1x128xf32>
      %23 = arith.divf %21, %22 : vector<1x128xf32>
      %24 = arith.mulf %18, %18 : vector<1x128xf32>
      %25 = arith.subf %23, %24 : vector<1x128xf32>
      %cst_16 = arith.constant 0.000000e+00 : f32
      %26 = vector.broadcast %cst_16 : f32 to vector<1x128xf32>
      %27 = arith.maximumf %25, %26 : vector<1x128xf32>
      %cst_17 = arith.constant 9.99999974E-6 : f32
      %28 = vector.broadcast %cst_17 : f32 to vector<1x128xf32>
      %29 = arith.addf %27, %28 : vector<1x128xf32>
      %30 = math.rsqrt %29 : vector<1x128xf32>
      %c0_18 = arith.constant 0 : index
      %c0_19 = arith.constant 0 : index
      %31 = vector.load %arg4[%c0_18, %c0_19] : memref<1x128xf32, #tpu.memory_space<vmem>>, vector<1x128xf32>
      %32 = arith.mulf %31, %30 : vector<1x128xf32>
      %c0_20 = arith.constant 0 : index
      %c0_21 = arith.constant 0 : index
      %33 = vector.load %arg5[%c0_20, %c0_21] : memref<1x128xf32, #tpu.memory_space<vmem>>, vector<1x128xf32>
      %34 = arith.mulf %32, %18 : vector<1x128xf32>
      %35 = arith.subf %33, %34 : vector<1x128xf32>
      %36 = vector.broadcast %32 : vector<1x128xf32> to vector<8x128xf32>
      %37 = arith.mulf %14, %36 : vector<8x128xf32>
      %38 = vector.broadcast %35 : vector<1x128xf32> to vector<8x128xf32>
      %39 = arith.addf %37, %38 : vector<8x128xf32>
      %cst_22 = arith.constant 0.000000e+00 : f32
      %40 = vector.broadcast %cst_22 : f32 to vector<8x128xf32>
      %41 = arith.maximumf %39, %40 : vector<8x128xf32>
      %42 = arith.truncf %41 : vector<8x128xf32> to vector<8x128xbf16>
      %c0_23 = arith.constant 0 : index
      %c0_24 = arith.constant 0 : index
      %43 = vector.load %arg6[%c0_23, %c0_24] : memref<8x128xbf16, #tpu.memory_space<vmem>>, vector<8x128xbf16>
      tpu.vector_store %arg6[%c0_23, %c0_24], %42 {strides = array<i32>} : memref<8x128xbf16, #tpu.memory_space<vmem>>, vector<8x128xbf16>,
    } else {
    }
    return
  }
  func.func @transform_0(%arg0: i32, %arg1: i32) -> (i32, i32) {
    %c0_i32 = arith.constant 0 : i32
    %c0_i32_0 = arith.constant 0 : i32
    return %c0_i32, %arg1 : i32, i32
  }
  func.func @transform_1(%arg0: i32, %arg1: i32) -> (i32, i32) {
    %c0_i32 = arith.constant 0 : i32
    return %arg0, %arg1 : i32, i32
  }
  func.func @transform_2(%arg0: i32, %arg1: i32) -> (i32, i32) {
    %c0_i32 = arith.constant 0 : i32
    %c0_i32_0 = arith.constant 0 : i32
    return %c0_i32, %arg0 : i32, i32
  }
  func.func @transform_3(%arg0: i32, %arg1: i32) -> (i32, i32) {
    %c0_i32 = arith.constant 0 : i32
    %c0_i32_0 = arith.constant 0 : i32
    return %c0_i32, %arg0 : i32, i32
  }
  func.func @transform_4(%arg0: i32, %arg1: i32) -> (i32, i32) {
    %c0_i32 = arith.constant 0 : i32
    %c0_i32_0 = arith.constant 0 : i32
    return %c0_i32, %arg0 : i32, i32
  }
}

</mosaic_0001>

<bundles_post_ra>
// kernel: prediction_mlp.2
= control target key start
LH: loop header
LB: loop body
LE: loop exit
PB: predicated region body
PF: predicated region fallthrough
CT: control target
= control target key end

     0   :  { %9 = vsyncpa [#allocation4], 0  ;;  %s361_s0 = inlined_call_operand.hbm [shape: f32[8,256], index: 0, kind: input, shape index: {}]   ;;  %s362_s1 = inlined_call_operand.hbm [shape: f32[128,256], index: 1, kind: input, shape index: {}]   ;;  %s363_s2 = inlined_call_operand.hbm [shape: f32[1,128], index: 2, kind: input, shape index: {}]   ;;  %s364_s3 = inlined_call_operand.hbm [shape: f32[1,128], index: 3, kind: input, shape index: {}]   ;;  %s365_s4 = inlined_call_operand.vmem [shape: bf16[8,128], index: 4, kind: output, shape index: {}]  }
   0x1   :  { %10 = vsyncpa [#allocation6], 0 }
   0x2   :  { %11 = vsyncpa [#allocation9], 0  ;;  %s315_s15 = smov [#allocation5]  }
   0x3   :  { %s27_s16 = sshll.u32 %s315_s15, 4  ;;  %s28_s16 = int_to_ptr.vmem [resolvable:$true] %s27_s16 }
   0x4   :  { %s237_s17 = scalar_lea.vmem %s28_s16, 4096  ;;  %p242_p1 = scmp.lt.s32.totalorder %s28_s16, %s28_s16 }
   0x5   :  { %p238_p0 = scmp.ne.s32.totalorder %s28_s16, %s237_s17  ;;  %p243_p2 = scmp.lt.s32.totalorder %s237_s17, %s237_s17 }
   0x7   :  { %p244_p3 = por %p243_p2, %p242_p1 }
   0x9   :  { %p245_p4 = pnand %p244_p3, %p238_p0 }
   0xb   :  { %248 = shalt.err (!%p245_p4)
}
   0xc   :  { %s316_s18 = smov 256   ;;  %s317_s19 = smov 16  }
   0xd   :  { %33 = dma.hbm_to_vmem [thread:$0]  %s362_s1, 4096, %s28_s16, [#allocation6], %s316_s18, %s316_s18, %s317_s19  }
   0xe   :  { %s318_s22 = smov [#allocation3]   ;;  %s319_s24 = smov [#allocation7]  }
   0xf   :  { %s18_s23 = sshll.u32 %s318_s22, 4  ;;  %s40_s25 = sshll.u32 %s319_s24, 4  ;;  %s19_s23 = int_to_ptr.vmem [resolvable:$true] %s18_s23  ;;  %s41_s25 = int_to_ptr.vmem [resolvable:$true] %s40_s25 }
  0x10   :  { %s257_s26 = scalar_lea.vmem %s19_s23, 256  ;;  %p262_p6 = scmp.lt.s32.totalorder %s19_s23, %s19_s23 }
  0x11   :  { %p258_p5 = scmp.ne.s32.totalorder %s19_s23, %s257_s26  ;;  %p263_p7 = scmp.lt.s32.totalorder %s257_s26, %s257_s26 }
  0x13   :  { %p264_p8 = por %p263_p7, %p262_p6 }
  0x15   :  { %p265_p9 = pnand %p264_p8, %p258_p5 }
  0x17   :  { %268 = shalt.err (!%p265_p9)
}
  0x18   :  { %21 = dma.hbm_to_vmem [thread:$0]  %s361_s0, 256, %s19_s23, [#allocation4]  }
  0x19   :  { %s277_s29 = scalar_lea.vmem %s41_s25, 16  ;;  %s281_s1 = scalar_lea.vmem %s41_s25, 32 }
  0x1a   :  { %p278_p10 = scmp.ne.s32.totalorder %s41_s25, %s277_s29  ;;  %p282_p11 = scmp.lt.s32.totalorder %s41_s25, %s41_s25 }
  0x1b   :  { %p283_p12 = scmp.lt.s32.totalorder %s281_s1, %s277_s29 }
  0x1d   :  { %p284_p13 = por %p283_p12, %p282_p11 }
  0x1f   :  { %p285_p0 = pnand %p284_p13, %p278_p10 }
  0x21   :  { %288 = shalt.err (!%p285_p0)
}
  0x22   :  { %43 = dma.hbm_to_vmem [thread:$0]  %s363_s2, 16, %s41_s25, [#allocation6]  }
  0x23   :  { %s320_s6 = smov [#allocation8]  }
  0x24   :  { %s50_s7 = sshll.u32 %s320_s6, 4  ;;  %s51_s7 = int_to_ptr.vmem [resolvable:$true] %s50_s7 }
  0x25   :  { %s297_s8 = scalar_lea.vmem %s51_s7, 16  ;;  %s301_s9 = scalar_lea.vmem %s51_s7, 32 }
  0x26   :  { %p298_p1 = scmp.ne.s32.totalorder %s51_s7, %s297_s8  ;;  %p302_p2 = scmp.lt.s32.totalorder %s51_s7, %s51_s7 }
  0x27   :  { %p303_p3 = scmp.lt.s32.totalorder %s301_s9, %s297_s8 }
  0x29   :  { %p304_p4 = por %p303_p3, %p302_p2 }
  0x2b   :  { %p305_p5 = pnand %p304_p4, %p298_p1 }
  0x2d   :  { %308 = shalt.err (!%p305_p5)
}
  0x2e   :  { %53 = dma.hbm_to_vmem [thread:$0]  %s364_s3, 16, %s51_s7, [#allocation9]  }
  0x2f   :  { %309 = dma.done.wait [#allocation4], 256  }
  0x30   :  { %310 = vsyncadd [#allocation4], 4294967040 }
  0x31   :  { %311 = dma.done.wait [#allocation6], 4112  }
  0x32   :  { %312 = vsyncadd [#allocation6], 4294963184 }
  0x33   :  { %313 = dma.done.wait [#allocation9], 16  }
  0x34   :  { %314 = vsyncadd [#allocation9], 4294967280  ;;  %v105_v0 = vld [vmem:[#allocation5 + $0xe8] sm:$0xff]  ;;  %v107_v1 = vld [vmem:[#allocation5 + $0xf8] sm:$0xff] }
  0x35   :  { %v104_v2 = vld [vmem:[#allocation5 + $0xe0] sm:$0xff]  ;;  %v123_v3 = vpack.c.bf16 %v107_v1, %v105_v0  ;;  %v106_v4 = vld [vmem:[#allocation5 + $0xf0] sm:$0xff]  ;;  %v101_v5 = vld [vmem:[#allocation5 + $0xc8] sm:$0xff] }
  0x36   :  { %v103_v6 = vld [vmem:[#allocation5 + $0xd8] sm:$0xff]  ;;  %v122_v7 = vpack.c.bf16 %v106_v4, %v104_v2  ;;  %v100_v9 = vld [vmem:[#allocation5 + $0xc0] sm:$0xff]  ;;  %v102_v10 = vld [vmem:[#allocation5 + $0xd0] sm:$0xff] }
  0x37   :  { %v121_v8 = vpack.c.bf16 %v103_v6, %v101_v5  ;;  %125 = vmatprep.subr.bf16.mxu0 %v123_v3  ;;  %v97_v11 = vld [vmem:[#allocation5 + $0xa8] sm:$0xff]  ;;  %v99_v12 = vld [vmem:[#allocation5 + $0xb8] sm:$0xff]  ;;  %v120_v13 = vpack.c.bf16 %v102_v10, %v100_v9  ;;  %v96_v17 = vld [vmem:[#allocation5 + $0xa0] sm:$0xff] }
  0x38   :  { %126 = vmatpush1.bf16.xpose.msra.mxu0 %v122_v7  ;;  %v119_v14 = vpack.c.bf16 %v99_v12, %v97_v11  ;;  %v73_v15 = vld [vmem:[#allocation3 + $0x8] sm:$0xff]  ;;  %v98_v18 = vld [vmem:[#allocation5 + $0xb0] sm:$0xff]  ;;  %v93_v19 = vld [vmem:[#allocation5 + $0x88] sm:$0xff]  ;;  %v198_v11 = vlaneseq }
  0x39   :  { %127 = vmatprep.subr.bf16.mxu0 %v121_v8  ;;  %v75_v16 = vpack.c.bf16 %v73_v15, %v73_v15  ;;  %v95_v20 = vld [vmem:[#allocation5 + $0x98] sm:$0xff]  ;;  %v118_v21 = vpack.c.bf16 %v98_v18, %v96_v17  ;;  %v92_v23 = vld [vmem:[#allocation5 + $0x80] sm:$0xff]  ;;  %v94_v24 = vld [vmem:[#allocation5 + $0x90] sm:$0xff] }
  0x3a   :  { %v117_v22 = vpack.c.bf16 %v95_v20, %v93_v19  ;;  %v89_v25 = vld [vmem:[#allocation5 + $0x68] sm:$0xff]  ;;  %v91_v26 = vld [vmem:[#allocation5 + $0x78] sm:$0xff]  ;;  %v116_v27 = vpack.c.bf16 %v94_v24, %v92_v23  ;;  %v88_v29 = vld [vmem:[#allocation5 + $0x60] sm:$0xff]  ;;  %v199_v12 = vshrl.u32 %v198_v11, 7 }
  0x3b   :  { %157 = vmatprep.mubr.bf16.mxu0 %v75_v16  ;;  %v115_v28 = vpack.c.bf16 %v91_v26, %v89_v25  ;;  %v90_v30 = vld [vmem:[#allocation5 + $0x70] sm:$0xff]  ;;  %v85_v31 = vld [vmem:[#allocation5 + $0x48] sm:$0xff]  ;;  %v87_v32 = vld [vmem:[#allocation5 + $0x58] sm:$0xff] }
  0x3c   :  { %v114_v33 = vpack.c.bf16 %v90_v30, %v88_v29  ;;  %v113_v34 = vpack.c.bf16 %v87_v32, %v85_v31  ;;  %v84_v35 = vld [vmem:[#allocation5 + $0x40] sm:$0xff]  ;;  %v86_v36 = vld [vmem:[#allocation5 + $0x50] sm:$0xff]  ;;  %v81_v37 = vld [vmem:[#allocation5 + $0x28] sm:$0xff] }
  0x3d   :  { %v83_v38 = vld [vmem:[#allocation5 + $0x38] sm:$0xff]  ;;  %v112_v39 = vpack.c.bf16 %v86_v36, %v84_v35  ;;  %v80_v41 = vld [vmem:[#allocation5 + $0x20] sm:$0xff]  ;;  %v82_v42 = vld [vmem:[#allocation5 + $0x30] sm:$0xff] }
  0x3e   :  { %v111_v40 = vpack.c.bf16 %v83_v38, %v81_v37  ;;  %v77_v43 = vld [vmem:[#allocation5 + $0x8] sm:$0xff]  ;;  %v79_v44 = vld [vmem:[#allocation5 + $0x18] sm:$0xff]  ;;  %v110_v45 = vpack.c.bf16 %v82_v42, %v80_v41  ;;  %v76_v47 = vld [vmem:[#allocation5] sm:$0xff] }
  0x3f   :  { %v109_v46 = vpack.c.bf16 %v79_v44, %v77_v43  ;;  %v78_v48 = vld [vmem:[#allocation5 + $0x10] sm:$0xff]  ;;  %v194_v17 = vld [vmem:[#allocation8] sm:$0x1] }
  0x40   :  { %128 = vmatpush1.bf16.xpose.msra.mxu0 %v120_v13  ;;  %v108_v49 = vpack.c.bf16 %v78_v48, %v76_v47  ;;  %v72_v50 = vld [vmem:[#allocation3] sm:$0xff]  ;;  %v192_v13 = vld [vmem:[#allocation7] sm:$0x1] }
  0x41   :  { %129 = vmatprep.subr.bf16.mxu0 %v119_v14  ;;  %v74_v51 = vpack.c.bf16 %v72_v50, %v72_v50  ;;  %v200_v14 = vsub.s32 0, %v199_v12 }
  0x48   :  { %130 = vmatpush1.bf16.xpose.msra.mxu0 %v118_v21 }
  0x49   :  { %131 = vmatprep.subr.bf16.mxu0 %v117_v22 }
  0x50   :  { %132 = vmatpush1.bf16.xpose.msra.mxu0 %v116_v27 }
  0x51   :  { %133 = vmatprep.subr.bf16.mxu0 %v115_v28 }
  0x58   :  { %134 = vmatpush1.bf16.xpose.msra.mxu0 %v114_v33 }
  0x59   :  { %135 = vmatprep.subr.bf16.mxu0 %v113_v34 }
  0x60   :  { %136 = vmatpush1.bf16.xpose.msra.mxu0 %v112_v39 }
  0x61   :  { %137 = vmatprep.subr.bf16.mxu0 %v111_v40 }
  0x68   :  { %138 = vmatpush1.bf16.xpose.msra.mxu0 %v110_v45 }
  0x69   :  { %139 = vmatprep.subr.bf16.mxu0 %v109_v46 }
  0x70   :  { %140 = vmatpush1.bf16.xpose.msra.mxu0 %v108_v49 }
  0x77   :  { %158 = vmatmul.mubr.bf16.vlgmr.msra.gmra.mxu0 %v74_v51 }
 0x137   :  { %v159_v52 = vpop.f32.mrf.mxu0 }
 0x138   :  { %v171_v53 = vrot.slane %v159_v52, 4  ;;  %v179_v54 = vmul.f32 %v159_v52, %v159_v52 }
 0x139   :  { %v161_v55 = vpop.f32.mrf.mxu0 }
 0x13a   :  { %v172_v56 = vadd.f32 %v171_v53, %v159_v52  ;;  %v180_v57 = vrot.slane %v179_v54, 4 }
 0x13b   :  { %v162_v58 = vpop.f32.mrf.mxu0 }
 0x13c   :  { %v173_v59 = vrot.slane %v172_v56, 2  ;;  %v181_v60 = vadd.f32 %v180_v57, %v179_v54 }
 0x13d   :  { %v163_v61 = vpop.f32.mrf.mxu0 }
 0x13e   :  { %v174_v62 = vadd.f32 %v173_v59, %v172_v56  ;;  %v182_v63 = vrot.slane %v181_v60, 2 }
 0x140   :  { %v175_v0 = vrot.slane %v174_v62, 1  ;;  %v183_v1 = vadd.f32 %v182_v63, %v181_v60 }
 0x142   :  { %v176_v2 = vadd.f32 %v175_v0, %v174_v62  ;;  %v184_v3 = vrot.slane %v183_v1, 1 }
 0x144   :  { %v178_v4 = vmul.f32 0.125, %v176_v2  ;;  %v185_v5 = vadd.f32 %v184_v3, %v183_v1 }
 0x146   :  { %v186_v6 = vmul.f32 0.125, %v185_v5  ;;  %v187_v7 = vmul.f32 %v178_v4, %v178_v4 }
 0x148   :  { %v188_v8 = vsub.f32 %v186_v6, %v187_v7 }
 0x14a   :  { %v189_v9 = vmax.f32 %v188_v8, 0.0 }
 0x14c   :  { %v190_v10 = vadd.f32 1e-05, %v189_v9 }
 0x14e   :  { %227 = vrsqrt.f32 %v190_v10 }
 0x15b   :  { %v228_v15 = vpop.eup %227 }
 0x15c   :  { %v193_v16 = vmul.f32 %v228_v15, %v192_v13 }
 0x15e   :  { %v195_v18 = vmul.f32 %v193_v16, %v178_v4  ;;  %v201_v19 = vrot.slane %v193_v16, %v200_v14 }
 0x160   :  { %v196_v20 = vsub.f32 %v194_v17, %v195_v18  ;;  %v203_v21 = vmul.f32 %v201_v19, %v159_v52 }
 0x162   :  { %v208_v22 = vrot.slane %v196_v20, %v200_v14 }
 0x164   :  { %v210_v23 = vadd.f32 %v208_v22, %v203_v21 }
 0x166   :  { %v211_v24 = vmax.f32 %v210_v23, 0.0 }
 0x168   :  { %v212_v25 = vpack.c.bf16 %v211_v24, %v211_v24 }
 0x16a   :  { %213 = vst [vmem:[%s365_s4] sm:$0xf] %v212_v25 }
 0x16b   :  { %218 = vsyncpa [#allocation4], 1 }
 0x16c   :  { %219 = vsyncpa [#allocation6], 1 }
 0x16d   :  { %220 = vsyncpa [#allocation9], 1 }

// kernel: prediction_mlp.3
= control target key start
LH: loop header
LB: loop body
LE: loop exit
PB: predicated region body
PF: predicated region fallthrough
CT: control target
= control target key end

     0   :  { %s301_s0 = inlined_call_operand.vmem [shape: bf16[8,128], index: 0, kind: input, shape index: {}]   ;;  %s302_s1 = inlined_call_operand.vmem [shape: f32[256,128], index: 1, kind: input, shape index: {}]   ;;  %s303_s2 = inlined_call_operand.vmem [shape: f32[1,256], index: 2, kind: input, shape index: {}]   ;;  %s304_s3 = inlined_call_operand.hbm [shape: f32[8,256], index: 3, kind: output, shape index: {}]  }
   0x1   :  { %v47_v0 = vld [vmem:[%s302_s1 + $0xf0] sm:$0xff]  ;;  %v48_v1 = vld [vmem:[%s302_s1 + $0xf8] sm:$0xff]  ;;  %v45_v5 = vld [vmem:[%s302_s1 + $0xe0] sm:$0xff] }
   0x2   :  { %v31_v2 = vld [vmem:[%s302_s1 + $0x70] sm:$0xff]  ;;  %v64_v3 = vpack.c.bf16 %v48_v1, %v47_v0  ;;  %v32_v4 = vld [vmem:[%s302_s1 + $0x78] sm:$0xff]  ;;  %v46_v6 = vld [vmem:[%s302_s1 + $0xe8] sm:$0xff] }
   0x3   :  { %v56_v7 = vpack.c.bf16 %v32_v4, %v31_v2  ;;  %v63_v8 = vpack.c.bf16 %v46_v6, %v45_v5  ;;  %v29_v9 = vld [vmem:[%s302_s1 + $0x60] sm:$0xff]  ;;  %v30_v10 = vld [vmem:[%s302_s1 + $0x68] sm:$0xff]  ;;  %v43_v11 = vld [vmem:[%s302_s1 + $0xd0] sm:$0xff] }
   0x4   :  { %134 = vmatprep.subr.bf16.mxu0 %v64_v3  ;;  %v44_v12 = vld [vmem:[%s302_s1 + $0xd8] sm:$0xff]  ;;  %v55_v13 = vpack.c.bf16 %v30_v10, %v29_v9  ;;  %v16_v15 = vld [vmem:[%s301_s0] sm:$0xf] }
   0x5   :  { %135 = vmatpush3.bf16.xpose.msra.mxu0 %v56_v7  ;;  %v62_v14 = vpack.c.bf16 %v44_v12, %v43_v11  ;;  %150 = vmatprep.mubr.bf16.mxu0 %v16_v15 }
   0x6   :  { %136 = vmatprep.subr.bf16.mxu0 %v63_v8 }
   0x7   :  { %8 = vsyncpa [#allocation3], 0  ;;  %v27_v16 = vld [vmem:[%s302_s1 + $0x50] sm:$0xff]  ;;  %v28_v17 = vld [vmem:[%s302_s1 + $0x58] sm:$0xff]  ;;  %v67_v49 = vlaneseq  ;;  %s175_s24 = smov [#allocation2]  }
   0x8   :  { %v41_v18 = vld [vmem:[%s302_s1 + $0xc0] sm:$0xff]  ;;  %v42_v19 = vld [vmem:[%s302_s1 + $0xc8] sm:$0xff]  ;;  %v54_v20 = vpack.c.bf16 %v28_v17, %v27_v16  ;;  %v39_v24 = vld [vmem:[%s302_s1 + $0xb0] sm:$0xff]  ;;  %s126_s25 = sshll.u32 %s175_s24, 4  ;;  %s127_s25 = int_to_ptr.vmem [resolvable:$true] %s126_s25 }
   0x9   :  { %v61_v21 = vpack.c.bf16 %v42_v19, %v41_v18  ;;  %v25_v22 = vld [vmem:[%s302_s1 + $0x40] sm:$0xff]  ;;  %v26_v23 = vld [vmem:[%s302_s1 + $0x48] sm:$0xff]  ;;  %v40_v25 = vld [vmem:[%s302_s1 + $0xb8] sm:$0xff]  ;;  %v68_v50 = vshrl.u32 %v67_v49, 7  ;;  %p158_p1 = scmp.lt.s32.totalorder %s127_s25, %s127_s25 }
   0xa   :  { %v53_v26 = vpack.c.bf16 %v26_v23, %v25_v22  ;;  %v60_v27 = vpack.c.bf16 %v40_v25, %v39_v24  ;;  %v23_v28 = vld [vmem:[%s302_s1 + $0x30] sm:$0xff]  ;;  %v24_v29 = vld [vmem:[%s302_s1 + $0x38] sm:$0xff]  ;;  %v37_v30 = vld [vmem:[%s302_s1 + $0xa0] sm:$0xff] }
   0xb   :  { %v38_v31 = vld [vmem:[%s302_s1 + $0xa8] sm:$0xff]  ;;  %v52_v32 = vpack.c.bf16 %v24_v29, %v23_v28  ;;  %v21_v34 = vld [vmem:[%s302_s1 + $0x20] sm:$0xff]  ;;  %v35_v36 = vld [vmem:[%s302_s1 + $0x90] sm:$0xff]  ;;  %v69_v51 = vsub.s32 0, %v68_v50  ;;  %v73_v53 = vsub.s32 1, %v68_v50 }
   0xc   :  { %v59_v33 = vpack.c.bf16 %v38_v31, %v37_v30  ;;  %v22_v35 = vld [vmem:[%s302_s1 + $0x28] sm:$0xff]  ;;  %v36_v37 = vld [vmem:[%s302_s1 + $0x98] sm:$0xff]  ;;  %v19_v40 = vld [vmem:[%s302_s1 + $0x10] sm:$0xff] }
   0xd   :  { %137 = vmatpush3.bf16.xpose.msra.mxu0 %v55_v13  ;;  %v51_v38 = vpack.c.bf16 %v22_v35, %v21_v34  ;;  %v58_v39 = vpack.c.bf16 %v36_v37, %v35_v36  ;;  %v20_v41 = vld [vmem:[%s302_s1 + $0x18] sm:$0xff]  ;;  %v33_v42 = vld [vmem:[%s302_s1 + $0x80] sm:$0xff]  ;;  %v34_v43 = vld [vmem:[%s302_s1 + $0x88] sm:$0xff] }
   0xe   :  { %138 = vmatprep.subr.bf16.mxu0 %v62_v14  ;;  %v50_v44 = vpack.c.bf16 %v20_v41, %v19_v40  ;;  %v57_v45 = vpack.c.bf16 %v34_v43, %v33_v42  ;;  %v17_v46 = vld [vmem:[%s302_s1] sm:$0xff]  ;;  %v18_v47 = vld [vmem:[%s302_s1 + $0x8] sm:$0xff]  ;;  %s153_s1 = scalar_lea.vmem %s127_s25, 256 }
   0xf   :  { %v49_v48 = vpack.c.bf16 %v18_v47, %v17_v46  ;;  %v65_v52 = vld [vmem:[%s303_s2] sm:$0x3]  ;;  %p154_p0 = scmp.ne.s32.totalorder %s127_s25, %s153_s1  ;;  %p159_p2 = scmp.lt.s32.totalorder %s153_s1, %s153_s1 }
  0x10   :  { %v70_v54 = vrot.slane %v65_v52, %v69_v51  ;;  %v74_v55 = vrot.slane %v65_v52, %v73_v53 }
  0x11   :  { %p160_p3 = por %p159_p2, %p158_p1 }
  0x13   :  { %p161_p4 = pnand %p160_p3, %p154_p0 }
  0x15   :  { %139 = vmatpush3.bf16.xpose.msra.mxu0 %v54_v20 }
  0x16   :  { %140 = vmatprep.subr.bf16.mxu0 %v61_v21 }
  0x1d   :  { %141 = vmatpush3.bf16.xpose.msra.mxu0 %v53_v26 }
  0x1e   :  { %142 = vmatprep.subr.bf16.mxu0 %v60_v27 }
  0x25   :  { %143 = vmatpush3.bf16.xpose.msra.mxu0 %v52_v32 }
  0x26   :  { %144 = vmatprep.subr.bf16.mxu0 %v59_v33 }
  0x2d   :  { %145 = vmatpush3.bf16.xpose.msra.mxu0 %v51_v38 }
  0x2e   :  { %146 = vmatprep.subr.bf16.mxu0 %v58_v39 }
  0x35   :  { %147 = vmatpush3.bf16.xpose.msra.mxu0 %v50_v44 }
  0x36   :  { %148 = vmatprep.subr.bf16.mxu0 %v57_v45 }
  0x3d   :  { %149 = vmatpush3.bf16.xpose.msra.mxu0 %v49_v48 }
  0x44   :  { %151 = vmatmul.mubr.bf16.vlgmr.msra.gmra.mxu0 %v16_v15 }
 0x104   :  { %v111_v56 = vpop.f32.mrf.mxu0 }
 0x105   :  { %v112_v57 = vadd.f32 %v111_v56, %v70_v54 }
 0x106   :  { %v113_v58 = vpop.f32.mrf.mxu0 }
 0x107   :  { %118 = vst [vmem:[#allocation2] sm:$0xff] %v112_v57  ;;  %v114_v59 = vadd.f32 %v113_v58, %v74_v55 }
 0x108   :  { %v115_v60 = vpop.f32.mrf.mxu0 }
 0x109   :  { %119 = vst [vmem:[#allocation2 + $0x8] sm:$0xff] %v114_v59 }
 0x10a   :  { %v116_v61 = vpop.f32.mrf.mxu0 }
 0x10b   :  { %164 = shalt.err (!%p161_p4)
}
 0x10c   :  { %129 = dma.vmem_to_hbm [thread:$0]  %s127_s25, 256, %s304_s3, [#allocation3]  }
 0x10d   :  { %173 = dma.done.wait [#allocation3], 256  }
 0x10e   :  { %174 = vsyncadd [#allocation3], 4294967040 }
 0x10f   :  { %133 = vsyncpa [#allocation3], 1 }

</bundles_post_ra>
